<compile_context>
chip_gen: v7x
topology: tpu7x:2x2x1
jax: 0.10.0
libtpu: 0.0.40
codegen_flags: <defaults>
</compile_context>

<pallas_src>
import functools

import jax
import jax.numpy as jnp
from jax.experimental import pallas as pl
from jax.experimental.pallas import tpu as pltpu

_MIB = 1024 * 1024


def _ce_kernel(pred_ref, label_ref, out_ref, acc_ref, *, n_rows, tile_n, num_tiles):
    # pred_ref : (tile_n, C) logits tile in VMEM (input dtype, upcast in-kernel)
    # label_ref: (tile_n, 1) int32 targets tile in VMEM
    # out_ref  : (1, 1) f32 total NLL sum in SMEM, written once on the last tile
    # acc_ref  : (tile_n, 1) f32 VMEM accumulator of per-row NLL, resident across tiles
    t = pl.program_id(0)

    @pl.when(t == 0)
    def _init():
        acc_ref[...] = jnp.zeros_like(acc_ref)

    logits = pred_ref[...].astype(jnp.float32)                    # (tile_n, C)
    labels = label_ref[...]                                       # (tile_n, 1) int32

    # Numerically-stable log-softmax pieces; gather target from the *shifted* logits.
    row_max = jnp.max(logits, axis=-1, keepdims=True)             # (tile_n, 1)
    shifted = logits - row_max                                    # (tile_n, C)
    sum_exp = jnp.sum(jnp.exp(shifted), axis=-1, keepdims=True)   # (tile_n, 1)

    # (1, C) iota broadcast against (tile_n, 1) labels -- avoids a full-slab iota per tile.
    col_ids = jax.lax.broadcasted_iota(jnp.int32, (1, logits.shape[-1]), 1)
    tgt_shifted = jnp.sum(jnp.where(col_ids == labels, shifted, 0.0),
                          axis=-1, keepdims=True)                 # (tile_n, 1)

    per_sample = jnp.log(sum_exp) - tgt_shifted                   # (tile_n, 1) NLL per row

    if n_rows % tile_n != 0:
        # Only the final (partial) tile pays for the row mask; all other tiles are full.
        # NaN/Inf in garbage rows cannot leak: jnp.where selects 0.0 elementwise there.
        last = num_tiles - 1
        rows_left = n_rows - last * tile_n  # static Python int

        @pl.when(t == last)
        def _tail():
            row_ids = jax.lax.broadcasted_iota(jnp.int32, (tile_n, 1), 0)
            acc_ref[...] += jnp.where(row_ids < rows_left, per_sample, 0.0)

        @pl.when(t != last)
        def _body():
            acc_ref[...] += per_sample
    else:
        acc_ref[...] += per_sample

    @pl.when(t == num_tiles - 1)
    def _finalize():
        out_ref[0, 0] = jnp.sum(acc_ref[...])


def _vmem_capacity_bytes():
    try:
        return int(pltpu.get_tpu_info().vmem_capacity_bytes)
    except Exception:
        return 64 * _MIB  # conservative (v7x-sized) fallback


def _round_up(x, m):
    return (x + m - 1) // m * m


def _vmem_bytes_per_row(c, itemsize):
    # Conservative per-row VMEM cost, accounting for lane padding to 128:
    #  * double-buffered logits input tile
    #  * ~3 full-tile f32 intermediates (upcast/shifted, exp, where-product)
    #  * double-buffered (tile_n, 1) int32 label tile (lane-padded to 128)
    #  * a few (tile_n, 1) f32 temporaries plus the VMEM accumulator
    c_lanes = _round_up(c, 128)
    return (2 * c_lanes * itemsize) + (3 * c_lanes * 4) + (2 * 512) + (4 * 512)


def _pick_tile_n(n, c, itemsize, budget_bytes, max_tile_rows=None):
    sublane = {4: 8, 2: 16, 1: 32}.get(itemsize, 8)
    max_rows = max(sublane, budget_bytes // _vmem_bytes_per_row(c, itemsize))
    if max_tile_rows is not None:
        max_rows = min(max_rows, max(sublane, max_tile_rows))
    if n <= max_rows:
        return n  # single full-extent tile (always a legal block shape)
    return max(sublane, (max_rows // sublane) * sublane)


def cross_entropy_loss(pred, true, loss_weight=1.0, reduction="mean", *, _max_tile_rows=None):
    """pred: (N, C) float logits; true: (N,) integer class indices. Returns scalar f32 loss."""
    if reduction not in ("mean", "sum"):
        # TODO(synk): reduction='none' would need an (N,)-shaped output path.
        raise NotImplementedError(reduction)
    # TODO(synk): ignore_index / per-class weights of nn.CrossEntropyLoss are not implemented
    # (the module under test uses the defaults); out-of-range labels are not checked.
    # TODO(synk): very large class counts (LLM vocab) would want a C-chunked grid axis with an
    # online logsumexp; not needed at these shapes.
    # TODO(synk): on v7x a guaranteed 2-TensorCore split (pltpu.CORE_PARALLEL / pl.core_map)
    # could halve per-core HBM traffic; plain "parallel" semantics don't guarantee it, so the
    # split axis is omitted here.

    n, c = pred.shape
    itemsize = jnp.dtype(pred.dtype).itemsize
    labels2d = true.astype(jnp.int32).reshape(n, 1)

    vmem_capacity = _vmem_capacity_bytes()
    if vmem_capacity <= 64 * _MIB:        # v7x-class: 64 MiB physical VMEM
        budget, vmem_cap = 16 * _MIB, 32 * _MIB
    else:                                 # v5e / v6e: 128 MiB physical VMEM
        budget, vmem_cap = 40 * _MIB, 64 * _MIB

    tile_n = _pick_tile_n(n, c, itemsize, budget, _max_tile_rows)
    num_tiles = pl.cdiv(n, tile_n)

    kernel = functools.partial(_ce_kernel, n_rows=n, tile_n=tile_n, num_tiles=num_tiles)

    vmem_needed = tile_n * _vmem_bytes_per_row(c, itemsize) + 2 * _MIB
    vmem_limit = int(min(max(vmem_needed, 16 * _MIB), vmem_cap))

    total = pl.pallas_call(
        kernel,
        out_shape=jax.ShapeDtypeStruct((1, 1), jnp.float32),
        grid_spec=pltpu.PrefetchScalarGridSpec(
            num_scalar_prefetch=0,
            grid=(num_tiles,),
            in_specs=[
                pl.BlockSpec((tile_n, c), lambda t: (t, 0)),
                pl.BlockSpec((tile_n, 1), lambda t: (t, 0)),
            ],
            out_specs=pl.BlockSpec((1, 1), lambda t: (0, 0), memory_space=pltpu.SMEM),
            scratch_shapes=[pltpu.VMEM((tile_n, 1), jnp.float32)],
        ),
        compiler_params=pltpu.CompilerParams(
            dimension_semantics=("arbitrary",),
            vmem_limit_bytes=vmem_limit,
        ),
        cost_estimate=pl.CostEstimate(
            flops=int(5 * n * c),
            transcendentals=int(n * c),
            bytes_accessed=int(n * c * itemsize + n * 4 + 4),
        ),
    )(pred, labels2d)[0, 0]

    if reduction == "mean":
        total = total / jnp.float32(n)
    return jnp.float32(loss_weight) * total


def _reference(pred, true, loss_weight=1.0, reduction="mean"):
    # plain-JAX reference of torch.nn.CrossEntropyLoss
    logp = jax.nn.log_softmax(pred.astype(jnp.float32), axis=-1)
    nll = -jnp.take_along_axis(logp, true[:, None].astype(jnp.int32), axis=-1)[:, 0]
    red = jnp.mean(nll) if reduction == "mean" else jnp.sum(nll)
    return loss_weight * red


if __name__ == "__main__":
    key = jax.random.PRNGKey(0)
    k1, k2, k3, k4 = jax.random.split(key, 4)

    # small shape consistent with the module: batch=8 samples, 32 classes
    N, C = 8, 32
    pred = jax.random.normal(k1, (N, C), dtype=jnp.float32)
    true = jax.random.randint(k2, (N,), 0, C, dtype=jnp.int32)
    loss = jax.block_until_ready(cross_entropy_loss(pred, true, loss_weight=1.0))
    ref = _reference(pred, true, loss_weight=1.0)
    assert jnp.allclose(loss, ref, atol=1e-5, rtol=1e-5), (loss, ref)

    # reduction='sum' path
    loss_s = jax.block_until_ready(cross_entropy_loss(pred, true, loss_weight=2.0,
                                                      reduction="sum"))
    ref_s = _reference(pred, true, loss_weight=2.0, reduction="sum")
    assert jnp.allclose(loss_s, ref_s, atol=1e-4, rtol=1e-5), (loss_s, ref_s)

    # larger batch: single big tile under the byte budget
    N2, C2 = 300, 40
    pred2 = jax.random.normal(k3, (N2, C2), dtype=jnp.float32) * 5.0
    true2 = jax.random.randint(k4, (N2,), 0, C2, dtype=jnp.int32)
    loss2 = jax.block_until_ready(cross_entropy_loss(pred2, true2, loss_weight=0.5))
    ref2 = _reference(pred2, true2, loss_weight=0.5)
    assert jnp.allclose(loss2, ref2, atol=2e-4, rtol=2e-4), (loss2, ref2)

    # same data with a forced small tile: exercises multi-tile pipelining, the VMEM
    # accumulator across grid steps, and the @pl.when-guarded remainder-row mask
    loss3 = jax.block_until_ready(
        cross_entropy_loss(pred2, true2, loss_weight=0.5, _max_tile_rows=128))
    assert jnp.allclose(loss3, ref2, atol=2e-4, rtol=2e-4), (loss3, ref2)

    print("KERNEL_OK")
</pallas_src>

<mosaic_0001>
module attributes {stable_mosaic.version = 11 : i64} {
  func.func @_ce_kernel(%arg0: i32, %arg1: memref<8x32xf32, #tpu.memory_space<vmem>>, %arg2: memref<8x1xi32, #tpu.memory_space<vmem>>, %arg3: memref<1x1xf32, #tpu.memory_space<smem>>, %arg4: memref<8x1xf32, #tpu.memory_space<vmem>>) attributes {dimension_semantics = [#tpu.dimension_semantics<arbitrary>], iteration_bounds = array<i64: 1>, scalar_prefetch = 0 : i64, scratch_operands = 1 : i64, tpu.core_type = #tpu.core_type<tc>, window_params = [{transform_indices = @transform_0, window_bounds = array<i64: 8, 32>}, {transform_indices = @transform_1, window_bounds = array<i64: 8, 1>}, {transform_indices = @transform_2, window_bounds = array<i64: 1, 1>}]} {
    %c0_i32 = arith.constant 0 : i32
    %0 = arith.cmpi eq, %arg0, %c0_i32 : i32
    %1 = arith.extui %0 : i1 to i32
    %c0_i32_0 = arith.constant 0 : i32
    %2 = arith.cmpi ne, %1, %c0_i32_0 : i32
    scf.if %2 {
      %cst_13 = arith.constant 0.000000e+00 : f32
      %28 = vector.broadcast %cst_13 : f32 to vector<8x1xf32>
      %c0_14 = arith.constant 0 : index
      %c0_15 = arith.constant 0 : index
      %29 = vector.load %arg4[%c0_14, %c0_15] : memref<8x1xf32, #tpu.memory_space<vmem>>, vector<8x1xf32>
      tpu.vector_store %arg4[%c0_14, %c0_15], %28 {strides = array<i32>} : memref<8x1xf32, #tpu.memory_space<vmem>>, vector<8x1xf32>,
    } else {
    }
    %c0 = arith.constant 0 : index
    %c0_1 = arith.constant 0 : index
    %3 = vector.load %arg1[%c0, %c0_1] : memref<8x32xf32, #tpu.memory_space<vmem>>, vector<8x32xf32>
    %c0_2 = arith.constant 0 : index
    %c0_3 = arith.constant 0 : index
    %4 = vector.load %arg2[%c0_2, %c0_3] : memref<8x1xi32, #tpu.memory_space<vmem>>, vector<8x1xi32>
    %cst = arith.constant dense<0xFF800000> : vector<8xf32>
    %5 = vector.multi_reduction <maximumf>, %3, %cst [1] : vector<8x32xf32> to vector<8xf32>
    %6 = vector.shape_cast %5 : vector<8xf32> to vector<8x1xf32>
    %7 = vector.broadcast %6 : vector<8x1xf32> to vector<8x32xf32>
    %8 = arith.subf %3, %7 : vector<8x32xf32>
    %9 = math.exp %8 : vector<8x32xf32>
    %cst_4 = arith.constant dense<0.000000e+00> : vector<8xf32>
    %10 = vector.multi_reduction <add>, %9, %cst_4 [1] : vector<8x32xf32> to vector<8xf32>
    %11 = vector.shape_cast %10 : vector<8xf32> to vector<8x1xf32>
    %12 = tpu.iota {dimensions = array<i32: 1>} : vector<1x32xi32>
    %13 = vector.broadcast %12 : vector<1x32xi32> to vector<8x32xi32>
    %14 = vector.broadcast %4 : vector<8x1xi32> to vector<8x32xi32>
    %15 = arith.cmpi eq, %13, %14 : vector<8x32xi32>
    %cst_5 = arith.constant 0.000000e+00 : f32
    %16 = vector.broadcast %cst_5 : f32 to vector<8x32xf32>
    %17 = arith.select %15, %8, %16 : vector<8x32xi1>, vector<8x32xf32>
    %cst_6 = arith.constant dense<0.000000e+00> : vector<8xf32>
    %18 = vector.multi_reduction <add>, %17, %cst_6 [1] : vector<8x32xf32> to vector<8xf32>
    %19 = vector.shape_cast %18 : vector<8xf32> to vector<8x1xf32>
    %20 = math.log %11 : vector<8x1xf32>
    %21 = arith.subf %20, %19 : vector<8x1xf32>
    %c0_7 = arith.constant 0 : index
    %c0_8 = arith.constant 0 : index
    %22 = vector.load %arg4[%c0_7, %c0_8] : memref<8x1xf32, #tpu.memory_space<vmem>>, vector<8x1xf32>
    %23 = arith.addf %22, %21 : vector<8x1xf32>
    %c0_9 = arith.constant 0 : index
    %c0_10 = arith.constant 0 : index
    %24 = vector.load %arg4[%c0_9, %c0_10] : memref<8x1xf32, #tpu.memory_space<vmem>>, vector<8x1xf32>
    tpu.vector_store %arg4[%c0_9, %c0_10], %23 {strides = array<i32>} : memref<8x1xf32, #tpu.memory_space<vmem>>, vector<8x1xf32>,
    %c0_i32_11 = arith.constant 0 : i32
    %25 = arith.cmpi eq, %arg0, %c0_i32_11 : i32
    %26 = arith.extui %25 : i1 to i32
    %c0_i32_12 = arith.constant 0 : i32
    %27 = arith.cmpi ne, %26, %c0_i32_12 : i32
    scf.if %27 {
      %c0_13 = arith.constant 0 : index
      %c0_14 = arith.constant 0 : index
      %28 = vector.load %arg4[%c0_13, %c0_14] : memref<8x1xf32, #tpu.memory_space<vmem>>, vector<8x1xf32>
      %29 = vector.shape_cast %28 : vector<8x1xf32> to vector<1x8x1xf32>
      %cst_15 = arith.constant dense<0.000000e+00> : vector<1xf32>
      %30 = vector.multi_reduction <add>, %29, %cst_15 [1, 2] : vector<1x8x1xf32> to vector<1xf32>
      %31 = vector.shape_cast %30 : vector<1xf32> to vector<1x1x1xf32>
      %32 = vector.extract %31[0, 0, 0] : f32 from vector<1x1x1xf32>
      %c0_16 = arith.constant 0 : index
      %c0_17 = arith.constant 0 : index
      %33 = memref.load %arg3[%c0_16, %c0_17] : memref<1x1xf32, #tpu.memory_space<smem>>
      memref.store %32, %arg3[%c0_16, %c0_17] : memref<1x1xf32, #tpu.memory_space<smem>>
    } else {
    }
    return
  }
  func.func @transform_0(%arg0: i32) -> (i32, i32) {
    %c0_i32 = arith.constant 0 : i32
    %c0_i32_0 = arith.constant 0 : i32
    return %arg0, %c0_i32 : i32, i32
  }
  func.func @transform_1(%arg0: i32) -> (i32, i32) {
    %c0_i32 = arith.constant 0 : i32
    %c0_i32_0 = arith.constant 0 : i32
    return %arg0, %c0_i32 : i32, i32
  }
  func.func @transform_2(%arg0: i32) -> (i32, i32) {
    %c0_i32 = arith.constant 0 : i32
    %c0_i32_0 = arith.constant 0 : i32
    %c0_i32_1 = arith.constant 0 : i32
    return %c0_i32, %c0_i32_0 : i32, i32
  }
}

</mosaic_0001>

<bundles_post_ra>
// kernel: tpu_custom_call.1
= control target key start
LH: loop header
LB: loop body
LE: loop exit
PB: predicated region body
PF: predicated region fallthrough
CT: control target
= control target key end

     0   :  { %vm20_vm0 = vcmask 261120   ;;  %s137_s0 = inlined_call_operand.vmem [shape: f32[8,32], index: 0, kind: input, shape index: {}]   ;;  %s138_s1 = inlined_call_operand.vmem [shape: s32[8,1], index: 1, kind: input, shape index: {}]   ;;  %s139_s2 = inlined_call_operand.hbm [shape: f32[1,1], index: 2, kind: output, shape index: {}]  }
   0x1   :  { %v18_v0 = vld [vmem:[%s137_s0] sm:$0xff] }
   0x2   :  { %7 = vsyncpa [#allocation4], 0  ;;  %v21_v1 = vsel %vm20_vm0, %v18_v0, -inf  ;;  %v98_v2 = vmov 0   ;;  %v19_v3 = vld [vmem:[%s138_s1] sm:$0xff]  ;;  %v30_v7 = vlaneseq  ;;  %vm16_vm2 = vcmask 7168  }
   0x3   :  { %81 = vset.pattern.permute.xlu0 %v98_v2  ;;  %v99_v14 = vmov 0.0   ;;  %s86_s14 = scalar_lea.hbm %s139_s2, 16 }
   0x4   :  { %22 = vmax.xlane.f32.xlu0 %v21_v1  ;;  %v31_v8 = vand.u32 127, %v30_v7  ;;  %17 = vst.msk [vmem:[#allocation2] sm:$0xff] %vm16_vm2, %v99_v14  ;;  %p87_p0 = scmp.ne.s32.totalorder %s139_s2, %s86_s14  ;;  %p90_p1 = scmp.lt.u32.totalorder %s86_s14, %s139_s2 }
   0x6   :  { %p92_p2 = pnand %p90_p1, %p87_p0 }
   0xb   :  { %v43_v19 = vld [vmem:[#allocation2] sm:$0xff] }
  0x1a   :  { %33 = vperm.xlu0 %81, %v19_v3  }
  0x91   :  { %v23_v4 = vpop.xlane.xlu0 %22 }
  0x92   :  { %v24_v5 = vsub.f32 %v18_v0, %v23_v4 }
  0x94   :  { %v25_v6 = vmul.f32 1.442695, %v24_v5 }
  0x96   :  { %82 = vpow2.f32 %v25_v6 }
  0x99   :  { %v34_v9 = vpop.permute.xlu0 %33 }
  0x9a   :  { %vm35_vm1 = vcmp.eq.s32.totalorder %v31_v8, %v34_v9 }
  0x9b   :  { %v36_v12 = vsel %vm35_vm1, %v24_v5, 0.0 }
  0x9c   :  { %v37_v13 = vsel %vm20_vm0, %v36_v12, 0.0 }
  0xa0   :  { %v83_v10 = vpop.eup %82 }
  0xa1   :  { %v27_v11 = vsel %vm20_vm0, %v83_v10, 0.0 }
  0xa2   :  { %28 = vadd.xlane.f32.xlu1 %v27_v11 }
  0xa6   :  { %38 = vadd.xlane.f32.xlu1 %v37_v13 }
 0x12f   :  { %v29_v15 = vpop.xlane.xlu1 %28 }
 0x130   :  { %84 = vlog2.f32 %v29_v15 }
 0x133   :  { %v39_v18 = vpop.xlane.xlu1 %38 }
 0x13a   :  { %v85_v16 = vpop.eup %84 }
 0x13b   :  { %v41_v17 = vmul.f32 0.6931472, %v85_v16 }
 0x13d   :  { %v42_v20 = vsub.f32 %v41_v17, %v39_v18 }
 0x13f   :  { %v44_v21 = vadd.f32 %v43_v19, %v42_v20 }
 0x141   :  { %46 = vst.msk [vmem:[#allocation2] sm:$0xff] %vm16_vm2, %v44_v21 }
 0x148   :  { %v50_v22 = vld [vmem:[#allocation2] sm:$0xff] }
 0x149   :  { %v51_v23 = vsel %vm16_vm2, %v50_v22, 0.0 }
 0x14a   :  { %52 = vadd.xlane.f32.xlu1 %v51_v23 }
 0x1d7   :  { %v53_v24 = vpop.xlane.xlu1 %52 }
 0x1d8   :  { %v54_v25 = vrot.slane %v53_v24, 4 }
 0x1da   :  { %v55_v26 = vadd.f32 %v54_v25, %v53_v24 }
 0x1dc   :  { %v56_v27 = vrot.slane %v55_v26, 2 }
 0x1de   :  { %v57_v28 = vadd.f32 %v56_v27, %v55_v26 }
 0x1e0   :  { %v58_v29 = vrot.slane %v57_v28, 1 }
 0x1e2   :  { %v59_v30 = vadd.f32 %v58_v29, %v57_v28 }
 0x1e4   :  { %76 = vpush %v59_v30 }
 0x215   :  { %s77_s0 = spop %76 }
 0x216   :  { %62 = sst [smem:[#allocation3]] %s77_s0 }
 0x217   :  { %95 = shalt.err (!%p92_p2)
}
 0x218   :  { %s100_s19 = smov [#allocation3]  }
 0x219   :  { %70 = dma.smem_to_hbm %s100_s19, 16, %s139_s2, [#allocation4]  }
 0x21a   :  { %96 = dma.done.wait [#allocation4], 16  }
 0x21b   :  { %97 = vsyncadd [#allocation4], 4294967280 }
 0x21c   :  { %74 = sfence }
 0x21d   :  { %75 = vsyncpa [#allocation4], 1 }

</bundles_post_ra>
